<compile_context>
chip_gen: v5e
topology: v5e:2x2
jax: 0.10.0
libtpu: 0.0.40
codegen_flags: <defaults>
</compile_context>

<pallas_src>
import jax
import jax.numpy as jnp
from jax.experimental import pallas as pl
from jax.experimental.pallas import tpu as pltpu


def make_encoding(d_model: int, max_len: int = 512, dtype=jnp.float32) -> jnp.ndarray:
    """Deterministic sinusoidal positional-encoding table, shape (1, max_len, d_model).

    Build it once, in the activation dtype, at parameter-setup time.
    """
    position = jnp.arange(0, max_len, dtype=jnp.float32)[:, None]            # (max_len, 1)
    div_term = jnp.exp(
        jnp.arange(0, d_model, 2, dtype=jnp.float32)
        * -(jnp.log(jnp.float32(10000.0)) / d_model)
    )                                                                        # (ceil(d/2),)
    sin = jnp.sin(position * div_term)
    cos = jnp.cos(position * div_term)
    enc = jnp.zeros((max_len, d_model), dtype=jnp.float32)
    enc = enc.at[:, 0::2].set(sin)
    enc = enc.at[:, 1::2].set(cos[:, : d_model // 2])   # guard for odd d_model
    return enc[None].astype(dtype)                                           # (1, max_len, d_model)


def _add_pe_kernel(x_ref, enc_ref, o_ref):
    # x_ref / o_ref : (TB, T, L) tile (batch-blocked)
    # enc_ref       : (T, L) encoding tile, broadcast over the batch axis
    o_ref[...] = x_ref[...] + enc_ref[...]


_TARGET_TILE_BYTES = 4 * 1024 * 1024   # per-ref tile; <= ~24 MiB double-buffered total
_VMEM_LIMIT_BYTES = 32 * 1024 * 1024   # explicit scoped-VMEM limit (safe on v5e/v6e/v7x)


def _round_up(x: int, m: int) -> int:
    return (x + m - 1) // m * m


def _largest_divisor_leq(n: int, cap: int) -> int:
    """Largest divisor of n that is <= cap (>= 1). Keeps the batch grid exact."""
    cap = max(1, min(n, cap))
    while n % cap:
        cap -= 1
    return cap


def positional_encoding_forward(x: jnp.ndarray, encoding: jnp.ndarray) -> jnp.ndarray:
    """x: (B, S, D); encoding: (1, max_len, D). Returns x + encoding[:, :S]."""
    B, S, D = x.shape
    _, max_len, De = encoding.shape
    assert De == D and S <= max_len, "encoding table does not cover this input"

    # Cold path only: the table should already be built in the activation dtype at setup.
    enc = encoding if encoding.dtype == x.dtype else encoding.astype(x.dtype)

    itemsize = jnp.dtype(x.dtype).itemsize
    # sublane multiple for packed dtypes: f32 -> 8, bf16 -> 16, int8/fp8 -> 32
    sub = max(8, 32 // itemsize)
    budget_elems = _TARGET_TILE_BYTES // itemsize
    flat = S * D

    cparams = pltpu.CompilerParams(
        dimension_semantics=("parallel", "parallel"),
        vmem_limit_bytes=_VMEM_LIMIT_BYTES,
    )

    if flat % 128 == 0:
        # ---------- lane-dense path: flatten (S, D) -> rows of 128 lanes ----------
        rows = flat // 128
        # Tiny one-time slice+flatten of the table window (same row-major offsets as x).
        enc2 = enc[0, :S, :].reshape(rows, 128)
        x2 = x.reshape(B, rows, 128)

        budget_rows = max(sub, budget_elems // 128)
        rows_pb = _round_up(rows, sub)          # padded per-batch footprint in VMEM rows
        if rows <= budget_rows:
            tr = rows                           # full extent along rows -> always legal
            tb = _largest_divisor_leq(B, max(1, budget_rows // rows_pb))
        else:
            tr = max(sub, budget_rows // sub * sub)
            tb = 1

        # v7x: guarantee >= 2 grid blocks so both TensorCores get work.
        if pl.cdiv(rows, tr) * pl.cdiv(B, tb) == 1:
            if B >= 2:
                tb = _largest_divisor_leq(B, max(1, B // 2))
            elif tr > sub:
                tr = max(sub, _round_up(pl.cdiv(rows, 2), sub))

        grid = (pl.cdiv(rows, tr), pl.cdiv(B, tb))   # rows outer, batch inner -> enc reused
        out = pl.pallas_call(
            _add_pe_kernel,
            out_shape=jax.ShapeDtypeStruct((B, rows, 128), x.dtype),
            grid_spec=pltpu.PrefetchScalarGridSpec(
                num_scalar_prefetch=0,
                grid=grid,
                in_specs=[
                    pl.BlockSpec((tb, tr, 128), lambda r, b: (b, r, 0)),
                    pl.BlockSpec((tr, 128), lambda r, b: (r, 0)),
                ],
                out_specs=pl.BlockSpec((tb, tr, 128), lambda r, b: (b, r, 0)),
            ),
            compiler_params=cparams,
            input_output_aliases={0: 0},
        )(x2, enc2)
        return out.reshape(B, S, D)

    # ---------- fallback: D on the lane axis (full dim), tile over S and batch ----------
    enc2 = enc[0, :S, :]                        # (S, D): full-extent blocks stay legal
    lanes = _round_up(D, 128)                   # actual VMEM lanes per row (lane padding)
    rows_pb = _round_up(S, sub)                 # padded sublane rows per batch element
    budget_s = max(sub, budget_elems // lanes)
    if S <= budget_s:
        ts = S                                  # full extent along S -> always legal
        tb = _largest_divisor_leq(B, max(1, budget_s // rows_pb))
    else:
        ts = max(sub, budget_s // sub * sub)
        tb = 1

    if pl.cdiv(S, ts) * pl.cdiv(B, tb) == 1:
        if B >= 2:
            tb = _largest_divisor_leq(B, max(1, B // 2))
        elif ts > sub:
            ts = max(sub, _round_up(pl.cdiv(S, 2), sub))

    grid = (pl.cdiv(S, ts), pl.cdiv(B, tb))     # S-tile outer, batch inner
    return pl.pallas_call(
        _add_pe_kernel,
        out_shape=jax.ShapeDtypeStruct((B, S, D), x.dtype),
        grid_spec=pltpu.PrefetchScalarGridSpec(
            num_scalar_prefetch=0,
            grid=grid,
            in_specs=[
                pl.BlockSpec((tb, ts, D), lambda s, b: (b, s, 0)),
                pl.BlockSpec((ts, D), lambda s, b: (s, 0)),
            ],
            out_specs=pl.BlockSpec((tb, ts, D), lambda s, b: (b, s, 0)),
        ),
        compiler_params=cparams,
        input_output_aliases={0: 0},
    )(x, enc2)


if __name__ == "__main__":
    # Small shapes consistent with the module: batch=2, seq=8, d_model=32, max_len=512.
    B, S, D, MAX_LEN = 2, 8, 32, 512

    key = jax.random.PRNGKey(0)
    x = jax.random.normal(key, (B, S, D), dtype=jnp.float32)

    # Table built once, already in the activation dtype (no per-call convert).
    encoding = make_encoding(D, MAX_LEN, dtype=x.dtype)

    # Plain-JAX reference (computed before the kernel call).
    ref = x + encoding[:, :S, :]

    out = jax.block_until_ready(positional_encoding_forward(x, encoding))

    assert out.shape == (B, S, D)
    assert jnp.allclose(out, ref, atol=1e-6), "mismatch vs reference"

    print("KERNEL_OK")
</pallas_src>

<mosaic_0001>
module attributes {stable_mosaic.version = 11 : i64} {
  func.func @_add_pe_kernel(%arg0: i32, %arg1: i32, %arg2: memref<1x2x128xf32, #tpu.memory_space<vmem>>, %arg3: memref<2x128xf32, #tpu.memory_space<vmem>>, %arg4: memref<1x2x128xf32, #tpu.memory_space<vmem>>) attributes {dimension_semantics = [#tpu.dimension_semantics<parallel>, #tpu.dimension_semantics<parallel>], iteration_bounds = array<i64: 1, 2>, scalar_prefetch = 0 : i64, scratch_operands = 0 : i64, tpu.core_type = #tpu.core_type<tc>, window_params = [{transform_indices = @transform_0, window_bounds = array<i64: 1, 2, 128>}, {transform_indices = @transform_1, window_bounds = array<i64: 2, 128>}, {transform_indices = @transform_2, window_bounds = array<i64: 1, 2, 128>}]} {
    %c0 = arith.constant 0 : index
    %c0_0 = arith.constant 0 : index
    %c0_1 = arith.constant 0 : index
    %0 = vector.load %arg2[%c0, %c0_0, %c0_1] : memref<1x2x128xf32, #tpu.memory_space<vmem>>, vector<1x2x128xf32>
    %c0_2 = arith.constant 0 : index
    %c0_3 = arith.constant 0 : index
    %1 = vector.load %arg3[%c0_2, %c0_3] : memref<2x128xf32, #tpu.memory_space<vmem>>, vector<2x128xf32>
    %2 = vector.shape_cast %1 : vector<2x128xf32> to vector<1x2x128xf32>
    %3 = arith.addf %0, %2 : vector<1x2x128xf32>
    %c0_4 = arith.constant 0 : index
    %c0_5 = arith.constant 0 : index
    %c0_6 = arith.constant 0 : index
    %4 = vector.load %arg4[%c0_4, %c0_5, %c0_6] : memref<1x2x128xf32, #tpu.memory_space<vmem>>, vector<1x2x128xf32>
    tpu.vector_store %arg4[%c0_4, %c0_5, %c0_6], %3 {strides = array<i32>} : memref<1x2x128xf32, #tpu.memory_space<vmem>>, vector<1x2x128xf32>,
    return
  }
  func.func @transform_0(%arg0: i32, %arg1: i32) -> (i32, i32, i32) {
    %c0_i32 = arith.constant 0 : i32
    %c0_i32_0 = arith.constant 0 : i32
    return %arg1, %arg0, %c0_i32 : i32, i32, i32
  }
  func.func @transform_1(%arg0: i32, %arg1: i32) -> (i32, i32) {
    %c0_i32 = arith.constant 0 : i32
    %c0_i32_0 = arith.constant 0 : i32
    return %arg0, %c0_i32 : i32, i32
  }
  func.func @transform_2(%arg0: i32, %arg1: i32) -> (i32, i32, i32) {
    %c0_i32 = arith.constant 0 : i32
    %c0_i32_0 = arith.constant 0 : i32
    return %arg1, %arg0, %c0_i32 : i32, i32, i32
  }
}

</mosaic_0001>

<bundles_post_ra>
// kernel: tpu_custom_call.1
= control target key start
LH: loop header
LB: loop body
LE: loop exit
PB: predicated region body
PF: predicated region fallthrough
CT: control target
= control target key end

     0   :  { %7 = vsyncpa [#allocation3], 0  ;;  %s639_s0 = inlined_call_operand.hbm [shape: f32[2,2,128], index: 0, kind: input, shape index: {}, may-alias: {0,2}]   ;;  %s640_s1 = inlined_call_operand.vmem [shape: f32[2,128], index: 1, kind: input, shape index: {}]   ;;  %s641_s2 = inlined_call_operand.hbm [shape: f32[2,2,128], index: 2, kind: output, shape index: {}, may-alias: {0,2}]  }
   0x1   :  { %9 = vsyncpa [#allocation3 + $0x1], 0 }
   0x2   :  { %10 = vsyncpa [#allocation4], 0 }
   0x3   :  { %12 = vsyncpa [#allocation4 + $0x1], 0  ;;  %s516_s9 = smov 0   ;;  %s518_s10 = smov 0  }
   0x4   :  { %s520_s11 = smov 0   ;;  %s522_s12 = smov 0  }
   0x5   :  { %s524_s13 = smov 0   ;;  %s526_s14 = smov 0  }
   0x6 LB: > { %s311_s15 = sadd.s32 4294967295, %s499_s14   ;;  %s312_s16 = sadd.s32 4294967294, %s499_s14   ;;  %s499_s14 = sphi %s526_s14, %s18_s14   ;;  %s495_s13 = sphi %s524_s13, %s650_s13   ;;  %s491_s12 = sphi %s522_s12, %s649_s12   ;;  %s487_s11 = sphi %s520_s11, %s648_s11   ;;  %s483_s10 = sphi %s518_s10, %s647_s10   ;;  %s479_s9 = sphi %s516_s9, %s646_s9  }
   0x7   : > { %s27_s17 = sadd.s32 1, %s495_s13  ;;  %s39_s18 = sadd.s32 1, %s487_s11 }
   0x8   : > { %p28_p0 = scmp.ge.s32.totalorder %s27_s17, 2  ;;  %p46_p1 = scmp.ne.s32.totalorder %s487_s11, %s483_s10 }
   0x9   : > { %p47_p2 = scmp.eq.s32.totalorder %s499_s14, 0  ;;  %p52_p3 = scmp.ne.s32.totalorder %s483_s10, %s479_s9 }
   0xa   : > { %s652_s17 = smov (%p28_p0, %s27_s17), 0  ;;  %p53_p5 = scmp.eq.s32.totalorder %s311_s15, 0 }
   0xb   : > { %p557_p4 = por %p47_p2, %p46_p1  ;;  %s34_s20 = ssub.s32 %s495_s13, %s652_s17 }
   0xc   : > { %p104_p6 = scmp.eq.s32.totalorder %s311_s15, 1  ;;  %p37_p7 = scmp.eq.s32.totalorder %s34_s20, 0 }
   0xd   : > { %p563_p8 = por %p53_p5, %p52_p3  ;;  %p110_p10 = scmp.eq.s32.totalorder %s312_s16, 1 }
   0xe   : > { %p567_p9 = por %p104_p6, %p46_p1  ;;  %p315_p12 = scmp.ge.s32.totalorder %s499_s14, 2 }
   0xf   : > { %s572_s23 = scalar_select %p37_p7, %s487_s11, %s39_s18  }
  0x10   : > { %p574_p11 = por %p110_p10, %p52_p3  ;;  %p337_p13 = scmp.lt.s32.totalorder %s499_s14, 2 }
  0x11   : > { %s137_s25 = sand.u32 1, %s487_s11   ;;  %s317_s27 = sshll.u32 %s495_s13, 1 }
  0x12   : > { %s316_s26 = sshll.u32 %s137_s25, 1  ;;  %s146_s30 = scalar_lea.hbm %s639_s0, %s317_s27 }
  0x13   : > { %s141_s3 = scalar_lea.vmem [#allocation2], %s316_s26  ;;  %s148_s5 = sshll.u32 %s146_s30, 4  ;;  %s149_s5 = int_to_ptr.hbm [resolvable:$true] %s148_s5 }
  0x14   : > { %s150_s4 = sshll.u32 %s141_s3, 4  ;;  %p330_p0 = pnand %p337_p13, %p557_p4  ;;  %s151_s4 = int_to_ptr.vmem [resolvable:$true] %s150_s4 }
  0x15   : > { %p318_p1 = scmp.ge.s32.totalorder %s499_s14, 1  ;;  %p155_p2 = scmp.lt.s32.totalorder %s499_s14, 3 }
  0x16   : > { %s138_s6 = scalar_lea.sflag [#allocation3], %s137_s25 }
  0x17   : > { %332 = dma.hbm_to_vmem [thread:$0]  (!%p330_p0), %s149_s5, 32, %s151_s4, %s138_s6  }
  0x18   : > { %p156_p3 = pnand %p318_p1, %p155_p2 }
  0x19   : > { %s590_s7 = sand.u32 (!%p156_p3), 1, %s483_s10  }
  0x1a   : > { %159 = sbr.rel (%p156_p3) target bundleno = 47 (0x2f), region = 28  ;;  %s319_s8 = sshll.u32 (!%p156_p3), %s590_s7, 1 }
  0x1b   : > { %s162_s15 = scalar_lea.sflag (!%p156_p3), [#allocation3], %s590_s7  ;;  %s165_s16 = scalar_lea.vmem (!%p156_p3), [#allocation2], %s319_s8 }
  0x1f   : > { %470 = dma.done.wait (%p563_p8), %s162_s15, 32  }
  0x20   : > { %472 = vsyncadd (%p563_p8), %s162_s15, 4294967264  ;;  %s322_s18 = sshll.u32 %s491_s12, 1  ;;  %s190_s26 = scalar_lea.vmem [#allocation5], %s319_s8  ;;  %v195_v0 = vld [vmem:[%s165_s16] sm:$0x3] }
  0x21   : > { %s211_s25 = scalar_lea.hbm %s641_s2, %s322_s18  ;;  %s213_s27 = sshll.u32 %s190_s26, 4  ;;  %v196_v1 = vld [vmem:[%s640_s1] sm:$0x3]  ;;  %s214_s27 = int_to_ptr.vmem [resolvable:$true] %s213_s27 }
  0x22   : > { %s215_s28 = sshll.u32 %s211_s25, 4  ;;  %v197_v2 = vadd.f32 %v196_v1, %v195_v0  ;;  %s200_s21 = scalar_lea.sflag [#allocation4], %s590_s7  ;;  %s216_s28 = int_to_ptr.hbm [resolvable:$true] %s215_s28 }
  0x23   : > { %s431_s3 = sshra.s32 %s216_s28, 4  ;;  %s437_s6 = scalar_lea.hbm %s641_s2, 4  ;;  %s432_s3 = int_to_ptr.hbm [resolvable:$true] %s431_s3 }
  0x24   : > { %198 = vst [vmem:[%s190_s26] sm:$0x3] %v197_v2  ;;  %s433_s12 = scalar_lea.hbm %s432_s3, 2  ;;  %p438_p7 = scmp.lt.s32.totalorder %s432_s3, %s641_s2 }
  0x25   : > { %p434_p4 = scmp.ne.s32.totalorder %s432_s3, %s433_s12  ;;  %p439_p8 = scmp.lt.s32.totalorder %s437_s6, %s433_s12 }
  0x27   : > { %p435_p5 = pnand %p434_p4, %p567_p9  ;;  %p440_p10 = por %p439_p8, %p438_p7 }
  0x29   : > { %p436_p6 = pneg %p435_p5 }
  0x2b   : > { %p441_p13 = pnand %p440_p10, %p436_p6 }
  0x2d   : > { %444 = shalt.err (!%p441_p13)
}
  0x2e   : > { %327 = dma.vmem_to_hbm [thread:$0]  (%p567_p9), %s214_s27, 32, %s216_s28, %s200_s21  }
  0x2f PF: > { %s227_s7 = sand.u32 1, %s479_s9   ;;  %p334_p0 = pnand %p315_p12, %p574_p11 }
  0x30   : > { %s228_s16 = scalar_lea.sflag [#allocation4], %s227_s7 }
  0x31   : > { %p335_p1 = pneg %p334_p0 }
  0x33   : > { %474 = dma.done.wait (%p335_p1), %s228_s16, 32  }
  0x34   : > { %476 = vsyncadd (%p335_p1), %s228_s16, 4294967264  ;;  %s18_s14 = sadd.s32 1, %s499_s14   ;;  %s646_s9 = smov %s483_s10 }
  0x35   : > { %p15_p2 = scmp.ge.s32.totalorder %s18_s14, 4   ;;  %s647_s10 = smov %s487_s11 }
  0x36   : > { %s648_s11 = smov %s572_s23  ;;  %s649_s12 = smov %s495_s13 }
  0x37   : > { %s650_s13 = smov %s652_s17  ;;  %17 = sbr.rel (!%p15_p2) target bundleno = 6 (0x6), region = 76 }
  0x3c   :  { %234 = vsyncpa [#allocation3], 1 }
  0x3d   :  { %236 = vsyncpa [#allocation3 + $0x1], 1 }
  0x3e   :  { %237 = vsyncpa [#allocation4], 1 }
  0x3f   :  { %239 = vsyncpa [#allocation4 + $0x1], 1 }

</bundles_post_ra>
